<compile_context>
chip_gen: v6e
topology: v6e:2x2x1
jax: 0.10.0
libtpu: 0.0.40
codegen_flags: <defaults>
</compile_context>

<pallas_src>
import functools

import jax
import jax.numpy as jnp
from jax.experimental import pallas as pl
from jax.experimental.pallas import tpu as pltpu


def _ce_label_smooth_kernel(x_ref, lbl_ref, out_ref, *, epsilon, batch, tile_b,
                            ragged):
    # x_ref:   (TILE_B, C) logits block in VMEM
    # lbl_ref: (TILE_B, 1) int32 labels block in VMEM
    # out_ref: (1, 128)    f32 lane-dense per-block partial sum
    x = x_ref[...].astype(jnp.float32)                     # (TB, C)
    tb, c = x.shape

    # Numerically stable log-sum-exp pieces; log_probs never materialized.
    m = jnp.max(x, axis=1, keepdims=True)                   # (TB, 1)  XLU
    shifted = x - m                                          # (TB, C)  VPU
    lse = jnp.log(jnp.sum(jnp.exp(shifted), axis=1, keepdims=True))  # (TB, 1)

    # Fused weighted reduction over classes:
    #   w_c = eps/C + (1-eps)*[c == label]   (sum_c w_c == 1)
    #   per_row = -sum_c w_c * (shifted_c - lse) = lse - sum_c w_c * shifted_c
    labels = lbl_ref[...].astype(jnp.int32)                  # (TB, 1)
    col = jax.lax.broadcasted_iota(jnp.int32, (tb, c), 1)    # (TB, C)
    on_val = jnp.float32(1.0 - epsilon + epsilon / c)
    off_val = jnp.float32(epsilon / c)
    w = jnp.where(col == labels, on_val, off_val)            # (TB, C)
    per_row = lse - jnp.sum(w * shifted, axis=1, keepdims=True)  # (TB, 1)

    # Only the final (possibly ragged) block ever carries invalid rows; the
    # select is NaN-safe and all reductions above are strictly per-row.
    if ragged:
        i = pl.program_id(0)
        row = i * tile_b + jax.lax.broadcasted_iota(jnp.int32, (tb, 1), 0)
        per_row = jnp.where(row < batch, per_row, 0.0)

    # Lane-dense store of this block's partial sum; wrapper sums & divides by B.
    out_ref[...] = jnp.broadcast_to(jnp.sum(per_row), (1, 128)).astype(jnp.float32)


def _tpu_vmem_capacity_bytes():
    try:
        return int(pltpu.get_tpu_info().vmem_capacity_bytes)
    except Exception:
        # Most conservative assumption (v7x: 64 MiB per TensorCore).
        return 64 * 1024 * 1024


def _choose_tile_b(batch, num_classes, itemsize, *, target_block_bytes,
                   vmem_limit_bytes):
    """Rows per block: big enough to amortize per-step overhead, small enough
    that the REAL per-step footprint fits scoped VMEM with ~20% headroom.

    Footprint model (per row):
      2x double-buffered input block           : 2 * C * itemsize
      ~3x implicit (TILE_B, C) f32 temporaries : 3 * C * 4
          (x-as-f32, shifted, exp/w*shifted)
      2x lane-padded (TILE_B, 128) i32 labels  : 2 * 128 * 4
    """
    rows_stream = max(1, target_block_bytes // max(1, num_classes * itemsize))
    per_row_bytes = (2 * num_classes * itemsize
                     + 3 * num_classes * 4
                     + 2 * 128 * 4)
    rows_vmem = max(1, int(0.8 * vmem_limit_bytes) // per_row_bytes)
    tile = min(batch, rows_stream, rows_vmem, 2048)
    if tile < batch:
        # Align to the streamed dtype's sublane packing (f32: 8, bf16: 16,
        # int8/fp8: 32) so packed loads/reductions avoid relayout.
        align = 8 * max(1, 4 // itemsize)
        tile = max(align, (tile // align) * align)
    return int(tile)


def cross_entropy_label_smooth(inputs, targets, *, epsilon=0.1, tile_b=None):
    """inputs: (B, C) float logits (f32 or bf16); targets: (B,) int labels.
    Returns scalar f32 loss."""
    B, C = inputs.shape
    labels2d = targets.astype(jnp.int32).reshape(B, 1)
    itemsize = jnp.dtype(inputs.dtype).itemsize

    # Per-generation streaming / VMEM budget.
    cap = _tpu_vmem_capacity_bytes()
    if cap <= 64 * 1024 * 1024:                 # v7x-class: 64 MiB per TC
        target_block_bytes = 12 * 1024 * 1024
        vmem_limit_bytes = 48 * 1024 * 1024
    else:                                       # v5e / v6e: 128 MiB
        target_block_bytes = 8 * 1024 * 1024
        vmem_limit_bytes = 80 * 1024 * 1024

    if tile_b is None:
        tile_b = _choose_tile_b(B, C, itemsize,
                                target_block_bytes=target_block_bytes,
                                vmem_limit_bytes=vmem_limit_bytes)
    tile_b = int(tile_b)
    num_blocks = -(-B // tile_b)
    ragged = (B % tile_b) != 0

    kernel = functools.partial(
        _ce_label_smooth_kernel,
        epsilon=float(epsilon),
        batch=int(B),
        tile_b=tile_b,
        ragged=bool(ragged),
    )

    cost = pl.CostEstimate(
        flops=6 * B * C,
        transcendentals=B * C + B,
        bytes_accessed=B * C * itemsize + B * 4 + num_blocks * 128 * 4,
    )

    partials = pl.pallas_call(
        kernel,
        out_shape=jax.ShapeDtypeStruct((num_blocks, 128), jnp.float32),
        grid=(num_blocks,),
        in_specs=[
            pl.BlockSpec((tile_b, C), lambda i: (i, 0)),   # logits block
            pl.BlockSpec((tile_b, 1), lambda i: (i, 0)),   # labels block
        ],
        out_specs=pl.BlockSpec((1, 128), lambda i: (i, 0)),
        compiler_params=pltpu.CompilerParams(
            dimension_semantics=("parallel",),
            vmem_limit_bytes=vmem_limit_bytes,
        ),
        cost_estimate=cost,
    )(inputs, labels2d)

    return jnp.sum(partials[:, 0]) / jnp.float32(B)


def _reference(inputs, targets, epsilon=0.1):
    C = inputs.shape[1]
    logp = jax.nn.log_softmax(inputs.astype(jnp.float32), axis=1)
    onehot = jax.nn.one_hot(targets, C, dtype=jnp.float32)
    smoothed = (1.0 - epsilon) * onehot + epsilon / C
    return jnp.sum(jnp.mean(-smoothed * logp, axis=0))


if __name__ == "__main__":
    key = jax.random.PRNGKey(0)
    k1, k2, k3, k4 = jax.random.split(key, 4)

    # Case 1: single-block path (B=8, C=32), f32, auto tile.
    x1 = jax.random.normal(k1, (8, 32), dtype=jnp.float32)
    t1 = jax.random.randint(k2, (8,), 0, 32, dtype=jnp.int32)
    out1 = jax.block_until_ready(cross_entropy_label_smooth(x1, t1, epsilon=0.1))
    ref1 = _reference(x1, t1, epsilon=0.1)
    assert jnp.allclose(out1, ref1, rtol=1e-5, atol=1e-5), (out1, ref1)

    # Case 2: multi-block grid + ragged-tail masking (B=24, TILE_B=16), f32.
    x2 = jax.random.normal(k3, (24, 40), dtype=jnp.float32)
    t2 = jax.random.randint(k4, (24,), 0, 40, dtype=jnp.int32)
    out2 = jax.block_until_ready(
        cross_entropy_label_smooth(x2, t2, epsilon=0.1, tile_b=16))
    ref2 = _reference(x2, t2, epsilon=0.1)
    assert jnp.allclose(out2, ref2, rtol=1e-5, atol=1e-5), (out2, ref2)

    # Case 3: bf16 logits streamed as-is (cast to f32 per tile inside).
    x3 = x1.astype(jnp.bfloat16)
    out3 = jax.block_until_ready(cross_entropy_label_smooth(x3, t1, epsilon=0.1))
    ref3 = _reference(x3.astype(jnp.float32), t1, epsilon=0.1)
    assert jnp.allclose(out3, ref3, rtol=1e-4, atol=1e-4), (out3, ref3)

    print("KERNEL_OK")
</pallas_src>

<mosaic_0001>
module attributes {stable_mosaic.version = 11 : i64} {
  func.func @_ce_label_smooth_kernel(%arg0: i32, %arg1: memref<8x32xf32, #tpu.memory_space<vmem>>, %arg2: memref<8x1xi32, #tpu.memory_space<vmem>>, %arg3: memref<1x128xf32, #tpu.memory_space<vmem>>) attributes {dimension_semantics = [#tpu.dimension_semantics<parallel>], iteration_bounds = array<i64: 1>, scalar_prefetch = 0 : i64, scratch_operands = 0 : i64, tpu.core_type = #tpu.core_type<tc>, window_params = [{transform_indices = @transform_0, window_bounds = array<i64: 8, 32>}, {transform_indices = @transform_1, window_bounds = array<i64: 8, 1>}, {transform_indices = @transform_2, window_bounds = array<i64: 1, 128>}]} {
    %c0 = arith.constant 0 : index
    %c0_0 = arith.constant 0 : index
    %0 = vector.load %arg1[%c0, %c0_0] : memref<8x32xf32, #tpu.memory_space<vmem>>, vector<8x32xf32>
    %cst = arith.constant dense<0xFF800000> : vector<8xf32>
    %1 = vector.multi_reduction <maximumf>, %0, %cst [1] : vector<8x32xf32> to vector<8xf32>
    %2 = vector.shape_cast %1 : vector<8xf32> to vector<8x1xf32>
    %3 = vector.broadcast %2 : vector<8x1xf32> to vector<8x32xf32>
    %4 = arith.subf %0, %3 : vector<8x32xf32>
    %5 = math.exp %4 : vector<8x32xf32>
    %cst_1 = arith.constant dense<0.000000e+00> : vector<8xf32>
    %6 = vector.multi_reduction <add>, %5, %cst_1 [1] : vector<8x32xf32> to vector<8xf32>
    %7 = vector.shape_cast %6 : vector<8xf32> to vector<8x1xf32>
    %8 = math.log %7 : vector<8x1xf32>
    %c0_2 = arith.constant 0 : index
    %c0_3 = arith.constant 0 : index
    %9 = vector.load %arg2[%c0_2, %c0_3] : memref<8x1xi32, #tpu.memory_space<vmem>>, vector<8x1xi32>
    %10 = tpu.iota {dimensions = array<i32: 1>} : vector<8x32xi32>
    %11 = vector.broadcast %9 : vector<8x1xi32> to vector<8x32xi32>
    %12 = arith.cmpi eq, %10, %11 : vector<8x32xi32>
    %cst_4 = arith.constant 0.903124988 : f32
    %cst_5 = arith.constant 3.125000e-03 : f32
    %13 = vector.broadcast %cst_4 : f32 to vector<8x32xf32>
    %14 = vector.broadcast %cst_5 : f32 to vector<8x32xf32>
    %15 = arith.select %12, %13, %14 : vector<8x32xi1>, vector<8x32xf32>
    %16 = arith.mulf %15, %4 : vector<8x32xf32>
    %cst_6 = arith.constant dense<0.000000e+00> : vector<8xf32>
    %17 = vector.multi_reduction <add>, %16, %cst_6 [1] : vector<8x32xf32> to vector<8xf32>
    %18 = vector.shape_cast %17 : vector<8xf32> to vector<8x1xf32>
    %19 = arith.subf %8, %18 : vector<8x1xf32>
    %20 = vector.shape_cast %19 : vector<8x1xf32> to vector<1x8x1xf32>
    %cst_7 = arith.constant dense<0.000000e+00> : vector<1xf32>
    %21 = vector.multi_reduction <add>, %20, %cst_7 [1, 2] : vector<1x8x1xf32> to vector<1xf32>
    %22 = vector.shape_cast %21 : vector<1xf32> to vector<1x1x1xf32>
    %23 = vector.extract %22[0, 0, 0] : f32 from vector<1x1x1xf32>
    %24 = vector.broadcast %23 : f32 to vector<1x128xf32>
    %c0_8 = arith.constant 0 : index
    %c0_9 = arith.constant 0 : index
    %25 = vector.load %arg3[%c0_8, %c0_9] : memref<1x128xf32, #tpu.memory_space<vmem>>, vector<1x128xf32>
    tpu.vector_store %arg3[%c0_8, %c0_9], %24 {strides = array<i32>} : memref<1x128xf32, #tpu.memory_space<vmem>>, vector<1x128xf32>,
    return
  }
  func.func @transform_0(%arg0: i32) -> (i32, i32) {
    %c0_i32 = arith.constant 0 : i32
    %c0_i32_0 = arith.constant 0 : i32
    return %arg0, %c0_i32 : i32, i32
  }
  func.func @transform_1(%arg0: i32) -> (i32, i32) {
    %c0_i32 = arith.constant 0 : i32
    %c0_i32_0 = arith.constant 0 : i32
    return %arg0, %c0_i32 : i32, i32
  }
  func.func @transform_2(%arg0: i32) -> (i32, i32) {
    %c0_i32 = arith.constant 0 : i32
    %c0_i32_0 = arith.constant 0 : i32
    return %arg0, %c0_i32 : i32, i32
  }
}

</mosaic_0001>

<bundles_post_ra>
// kernel: tpu_custom_call.1
= control target key start
LH: loop header
LB: loop body
LE: loop exit
PB: predicated region body
PF: predicated region fallthrough
CT: control target
= control target key end

     0   :  { %vm13_vm0 = vcmask 261120   ;;  %s127_s0 = inlined_call_operand.vmem [shape: f32[8,32], index: 0, kind: input, shape index: {}]   ;;  %s128_s1 = inlined_call_operand.vmem [shape: s32[8,1], index: 1, kind: input, shape index: {}]   ;;  %s129_s2 = inlined_call_operand.hbm [shape: f32[1,128], index: 2, kind: output, shape index: {}]  }
   0x1   :  { %v12_v0 = vld [vmem:[%s127_s0] sm:$0xff] }
   0x2   :  { %7 = vsyncpa [#allocation3], 0  ;;  %v14_v1 = vsel %vm13_vm0, %v12_v0, -inf  ;;  %v97_v2 = vmov 0   ;;  %v25_v3 = vld [vmem:[%s128_s1] sm:$0xff]  ;;  %v26_v7 = vlaneseq  ;;  %vm38_vm2 = vcmask 7168  }
   0x3   :  { %70 = vset.pattern.permute.xlu0 %v97_v2  ;;  %v98_v10 = vmov 0.003125   ;;  %s99_s0 = smov [#allocation2]  }
   0x4   :  { %15 = vmax.xlane.f32.xlu0 %v14_v1  ;;  %v27_v8 = vand.u32 127, %v26_v7  ;;  %s57_s1 = sshll.u32 %s99_s0, 4  ;;  %s58_s1 = int_to_ptr.vmem [resolvable:$true] %s57_s1 }
   0x5   :  { %s75_s14 = scalar_lea.vmem %s58_s1, 16  ;;  %s79_s15 = scalar_lea.vmem %s58_s1, 32 }
   0x6   :  { %p76_p0 = scmp.ne.s32.totalorder %s58_s1, %s75_s14  ;;  %p80_p1 = scmp.lt.s32.totalorder %s58_s1, %s58_s1 }
   0x7   :  { %p81_p2 = scmp.lt.s32.totalorder %s79_s15, %s75_s14 }
   0x9   :  { %p82_p3 = por %p81_p2, %p80_p1 }
   0xb   :  { %p83_p4 = pnand %p82_p3, %p76_p0 }
  0x1a   :  { %29 = vperm.xlu0 %70, %v25_v3  }
  0x8d   :  { %v16_v4 = vpop.xlane.xlu0 %15 }
  0x8e   :  { %v17_v5 = vsub.f32 %v12_v0, %v16_v4 }
  0x90   :  { %v18_v6 = vmul.f32 1.442695, %v17_v5 }
  0x92   :  { %71 = vpow2.f32 %v18_v6 }
  0x95   :  { %v30_v9 = vpop.permute.xlu0 %29 }
  0x96   :  { %vm31_vm1 = vcmp.eq.s32.totalorder %v27_v8, %v30_v9 }
  0x97   :  { %v32_v11 = vsel %vm31_vm1, 0.903125, %v98_v10 }
  0x98   :  { %v33_v14 = vmul.f32 %v32_v11, %v17_v5 }
  0x9a   :  { %v34_v15 = vsel %vm13_vm0, %v33_v14, 0.0 }
  0x9f   :  { %v72_v12 = vpop.eup %71 }
  0xa0   :  { %v20_v13 = vsel %vm13_vm0, %v72_v12, 0.0 }
  0xa1   :  { %21 = vadd.xlane.f32.xlu1 %v20_v13 }
  0xa5   :  { %35 = vadd.xlane.f32.xlu1 %v34_v15 }
 0x12a   :  { %v22_v16 = vpop.xlane.xlu1 %21 }
 0x12b   :  { %73 = vlog2.f32 %v22_v16 }
 0x12e   :  { %v36_v19 = vpop.xlane.xlu1 %35 }
 0x138   :  { %v74_v17 = vpop.eup %73 }
 0x139   :  { %v24_v18 = vmul.f32 0.6931472, %v74_v17 }
 0x13b   :  { %v37_v20 = vsub.f32 %v24_v18, %v36_v19 }
 0x13d   :  { %v39_v21 = vsel %vm38_vm2, %v37_v20, 0.0 }
 0x13e   :  { %40 = vadd.xlane.f32.xlu1 %v39_v21 }
 0x1c7   :  { %v41_v22 = vpop.xlane.xlu1 %40 }
 0x1c8   :  { %v42_v23 = vrot.slane %v41_v22, 4 }
 0x1ca   :  { %v43_v24 = vadd.f32 %v42_v23, %v41_v22 }
 0x1cc   :  { %v44_v25 = vrot.slane %v43_v24, 2 }
 0x1ce   :  { %v45_v26 = vadd.f32 %v44_v25, %v43_v24 }
 0x1d0   :  { %v46_v27 = vrot.slane %v45_v26, 1 }
 0x1d2   :  { %v47_v28 = vadd.f32 %v46_v27, %v45_v26 }
 0x1d4   :  { %65 = vpush %v47_v28 }
 0x205   :  { %s66_s13 = spop %65 }
 0x206   :  { %v49_v29 = vstv %s66_s13 }
 0x207   :  { %50 = vst [vmem:[#allocation2] sm:$0x1] %v49_v29 }
 0x208   :  { %86 = shalt.err (!%p83_p4)
}
 0x209   :  { %60 = dma.vmem_to_hbm [thread:$0]  %s58_s1, 16, %s129_s2, [#allocation3]  }
 0x20a   :  { %95 = dma.done.wait [#allocation3], 16  }
 0x20b   :  { %96 = vsyncadd [#allocation3], 4294967280 }
 0x20c   :  { %64 = vsyncpa [#allocation3], 1 }

</bundles_post_ra>
